<compile_context>
chip_gen: v7x
topology: tpu7x:2x2x1
jax: 0.10.0
libtpu: 0.0.40
codegen_flags: <defaults>
</compile_context>

<pallas_src>
import functools

import jax
import jax.numpy as jnp
from jax.experimental import pallas as pl
from jax.experimental.pallas import tpu as pltpu


# --------------------------- Fused decoder kernel ----------------------------
def decoder_kernel(x_ref, w_ih_ref, w_hh_ref, b_ref, w_lin_ref, b_lin_ref,
                   o_ref, h_all_scr, *, B, T):
    """x_ref: (T*B, E) time-major; o_ref: (T*B, TILE_V); grid = (V // TILE_V,).

    Grid step 0 runs stages 1+2 (input projection + LSTM recurrence) and leaves
    the hidden states in the persistent VMEM scratch; every grid step runs
    stage 3 (vocab projection) for its V tile.
    """
    H = w_hh_ref.shape[0]

    # ---- Stages 1+2: only on the first V tile; scratch persists afterwards --
    @pl.when(pl.program_id(0) == 0)
    def _():
        # Stage 1: hoisted input projection, one bulk MXU matmul (T*B, 4H).
        gates_x = (
            jnp.dot(x_ref[...], w_ih_ref[...],
                    preferred_element_type=jnp.float32)
            + b_ref[...]
        )
        w_hh = w_hh_ref[...]

        # Stage 2: recurrence. ONE fused (B, H) @ (H, 4H) dot per step; the
        # per-gate lane slicing of the packed result is off the MXU path.
        # PyTorch nn.LSTM gate order: i, f, g, o.
        h = jnp.zeros((B, H), jnp.float32)
        c = jnp.zeros((B, H), jnp.float32)
        hs = []
        for t in range(T):  # fully unrolled; T is a static compile-time const
            gates = gates_x[t * B:(t + 1) * B, :] + jnp.dot(
                h, w_hh, preferred_element_type=jnp.float32)       # (B, 4H)
            i_g = jax.nn.sigmoid(gates[:, 0 * H:1 * H])
            f_g = jax.nn.sigmoid(gates[:, 1 * H:2 * H])
            g_g = jnp.tanh(gates[:, 2 * H:3 * H])
            o_g = jax.nn.sigmoid(gates[:, 3 * H:4 * H])
            c = f_g * c + i_g * g_g
            h = o_g * jnp.tanh(c)
            hs.append(h)
        # Single dense store of all hidden states (time-major (T*B, H)).
        # TODO(synk): at production T/B/H, stage gates_x in a VMEM scratch and
        # run the recurrence in lax.fori_loop(unroll=2..4) to bound live ranges.
        h_all_scr[...] = jnp.concatenate(hs, axis=0)

    # ---- Stage 3: vocab projection for this V tile (lane-dense output) ------
    # TODO(synk): for production sizes cast operands to bfloat16 here (keep
    # f32 accumulation via preferred_element_type).
    o_ref[...] = (
        jnp.dot(h_all_scr[...], w_lin_ref[...],
                preferred_element_type=jnp.float32)
        + b_lin_ref[...]
    ).astype(o_ref.dtype)


def run_decoder(x_tb, w_ih, w_hh, b_lstm, w_lin, b_lin, *, B, T, tile_v=None):
    """x_tb: (T*B, E) time-major; w_ih: (E, 4H); w_hh: (H, 4H); b_lstm: (1, 4H);
    w_lin: (H, V); b_lin: (1, V)  ->  logits (T*B, V) time-major."""
    TB, E = x_tb.shape
    H = w_hh.shape[0]
    V = w_lin.shape[1]
    if tile_v is None:
        tile_v = min(V, 512)
    assert V % tile_v == 0 and tile_v % 128 == 0
    grid = (V // tile_v,)

    kernel = functools.partial(decoder_kernel, B=B, T=T)
    return pl.pallas_call(
        kernel,
        out_shape=jax.ShapeDtypeStruct((TB, V), jnp.float32),
        grid=grid,
        in_specs=[
            pl.BlockSpec((TB, E), lambda j: (0, 0)),        # x (resident)
            pl.BlockSpec((E, 4 * H), lambda j: (0, 0)),     # W_ih (resident)
            pl.BlockSpec((H, 4 * H), lambda j: (0, 0)),     # W_hh (resident)
            pl.BlockSpec((1, 4 * H), lambda j: (0, 0)),     # lstm bias
            pl.BlockSpec((H, tile_v), lambda j: (0, j)),    # W_lin tile over V
            pl.BlockSpec((1, tile_v), lambda j: (0, j)),    # linear bias tile
        ],
        out_specs=pl.BlockSpec((TB, tile_v), lambda j: (0, j)),
        scratch_shapes=[pltpu.VMEM((TB, H), jnp.float32)],  # persists over grid
        compiler_params=pltpu.CompilerParams(
            # Later V tiles read the scratch written at grid step 0 -> serial.
            dimension_semantics=("arbitrary",),
            vmem_limit_bytes=64 << 20,
        ),
    )(x_tb, w_ih, w_hh, b_lstm, w_lin, b_lin)


# ------------------------------- Forward pass --------------------------------
@jax.jit
def decoder_rnn_forward(params, features, captions):
    """Matches DecoderRNN.forward: embed(captions[:, :-1]), prepend features,
    run LSTM, project to vocab. Returns (B, T, V) with T = captions.shape[1]."""
    # Embedding lookup + concat are plain-JAX glue (tiny gather).
    emb = jnp.take(params["embed"], captions[:, :-1], axis=0)      # (B, T-1, E)
    x = jnp.concatenate([features[:, None, :], emb], axis=1)       # (B, T, E)
    B, T, E = x.shape
    V = params["w_lin"].shape[1]
    # Time-major 2-D layout for the kernel (contiguous per-step row blocks).
    x_tb = jnp.transpose(x, (1, 0, 2)).reshape(T * B, E)           # (T*B, E)
    logits_tb = run_decoder(
        x_tb, params["w_ih"], params["w_hh"], params["b_lstm"],
        params["w_lin"], params["b_lin"], B=B, T=T,
    )                                                              # (T*B, V)
    return jnp.transpose(logits_tb.reshape(T, B, V), (1, 0, 2))    # (B, T, V)


# --------------------------- Pure-JAX reference -------------------------------
def reference_forward(params, features, captions):
    emb = jnp.take(params["embed"], captions[:, :-1], axis=0)
    x = jnp.concatenate([features[:, None, :], emb], axis=1)       # (B, T, E)
    B, T, E = x.shape
    H = params["w_hh"].shape[0]

    def step(carry, x_t):
        h, c = carry
        gates = x_t @ params["w_ih"] + h @ params["w_hh"] + params["b_lstm"][0]
        i = jax.nn.sigmoid(gates[:, 0 * H:1 * H])
        f = jax.nn.sigmoid(gates[:, 1 * H:2 * H])
        g = jnp.tanh(gates[:, 2 * H:3 * H])
        o = jax.nn.sigmoid(gates[:, 3 * H:4 * H])
        c = f * c + i * g
        h = o * jnp.tanh(c)
        return (h, c), h

    init = (jnp.zeros((B, H)), jnp.zeros((B, H)))
    _, hs = jax.lax.scan(step, init, jnp.transpose(x, (1, 0, 2)))
    hiddens = jnp.transpose(hs, (1, 0, 2))
    return hiddens @ params["w_lin"] + params["b_lin"][0]


# ----------------------------------- Main -------------------------------------
if __name__ == "__main__":
    embed_size, hidden_size, vocab_size = 32, 32, 128
    B, T_cap = 2, 8  # LSTM sequence length = 8 (image features + 7 tokens)

    key = jax.random.PRNGKey(0)
    ks = jax.random.split(key, 8)
    s = 1.0 / jnp.sqrt(hidden_size)
    params = {
        "embed": jax.random.normal(ks[0], (vocab_size, embed_size), jnp.float32),
        # LSTM weights stored transposed vs. PyTorch: (E, 4H) and (H, 4H)
        "w_ih": jax.random.uniform(ks[1], (embed_size, 4 * hidden_size), jnp.float32, -s, s),
        "w_hh": jax.random.uniform(ks[2], (hidden_size, 4 * hidden_size), jnp.float32, -s, s),
        # b_ih + b_hh folded into one bias
        "b_lstm": jax.random.uniform(ks[3], (1, 4 * hidden_size), jnp.float32, -s, s),
        "w_lin": jax.random.uniform(ks[4], (hidden_size, vocab_size), jnp.float32, -s, s),
        "b_lin": jax.random.uniform(ks[5], (1, vocab_size), jnp.float32, -s, s),
    }

    features = jax.random.normal(ks[6], (B, embed_size), jnp.float32)
    captions = jax.random.randint(ks[7], (B, T_cap), 0, vocab_size, jnp.int32)

    out = decoder_rnn_forward(params, features, captions)
    out = jax.block_until_ready(out)

    ref = reference_forward(params, features, captions)
    assert out.shape == (B, T_cap, vocab_size)
    assert jnp.allclose(out, ref, atol=1e-4, rtol=1e-4)

    # TODO(synk): DecoderRNN.sample (greedy decode loop) not implemented; only
    # forward() is translated.
    print("KERNEL_OK")
</pallas_src>

<mosaic_0001>
module attributes {stable_mosaic.version = 11 : i64} {
  func.func @decoder_kernel(%arg0: i32, %arg1: memref<16x32xf32, #tpu.memory_space<vmem>>, %arg2: memref<32x128xf32, #tpu.memory_space<vmem>>, %arg3: memref<32x128xf32, #tpu.memory_space<vmem>>, %arg4: memref<1x128xf32, #tpu.memory_space<vmem>>, %arg5: memref<32x128xf32, #tpu.memory_space<vmem>>, %arg6: memref<1x128xf32, #tpu.memory_space<vmem>>, %arg7: memref<16x128xf32, #tpu.memory_space<vmem>>, %arg8: memref<16x32xf32, #tpu.memory_space<vmem>>) attributes {dimension_semantics = [#tpu.dimension_semantics<arbitrary>], iteration_bounds = array<i64: 1>, scalar_prefetch = 0 : i64, scratch_operands = 1 : i64, tpu.core_type = #tpu.core_type<tc>, window_params = [{pipeline_mode = #tpu.pipeline_mode<synchronous>, transform_indices = @transform_0, window_bounds = array<i64: 16, 32>}, {pipeline_mode = #tpu.pipeline_mode<synchronous>, transform_indices = @transform_1, window_bounds = array<i64: 32, 128>}, {pipeline_mode = #tpu.pipeline_mode<synchronous>, transform_indices = @transform_2, window_bounds = array<i64: 32, 128>}, {pipeline_mode = #tpu.pipeline_mode<synchronous>, transform_indices = @transform_3, window_bounds = array<i64: 1, 128>}, {transform_indices = @transform_4, window_bounds = array<i64: 32, 128>}, {transform_indices = @transform_5, window_bounds = array<i64: 1, 128>}, {transform_indices = @transform_6, window_bounds = array<i64: 16, 128>}]} {
    %c0_i32 = arith.constant 0 : i32
    %0 = arith.cmpi eq, %arg0, %c0_i32 : i32
    %1 = arith.extui %0 : i1 to i32
    %c0_i32_0 = arith.constant 0 : i32
    %2 = arith.cmpi ne, %1, %c0_i32_0 : i32
    scf.if %2 {
      %c0_8 = arith.constant 0 : index
      %c0_9 = arith.constant 0 : index
      %10 = vector.load %arg1[%c0_8, %c0_9] : memref<16x32xf32, #tpu.memory_space<vmem>>, vector<16x32xf32>
      %c0_10 = arith.constant 0 : index
      %c0_11 = arith.constant 0 : index
      %11 = vector.load %arg2[%c0_10, %c0_11] : memref<32x128xf32, #tpu.memory_space<vmem>>, vector<32x128xf32>
      %cst_12 = arith.constant dense<0.000000e+00> : vector<16x128xf32>
      %12 = tpu.matmul %10, %11, %cst_12 {dimension_numbers = #tpu.dot_dimension_numbers<[1], [0], [0], [1], [0, 0, 1, 1], [], []>} : vector<16x32xf32>, vector<32x128xf32>, vector<16x128xf32> -> vector<16x128xf32>
      %c0_13 = arith.constant 0 : index
      %c0_14 = arith.constant 0 : index
      %13 = vector.load %arg4[%c0_13, %c0_14] : memref<1x128xf32, #tpu.memory_space<vmem>>, vector<1x128xf32>
      %14 = vector.broadcast %13 : vector<1x128xf32> to vector<16x128xf32>
      %15 = arith.addf %12, %14 : vector<16x128xf32>
      %c0_15 = arith.constant 0 : index
      %c0_16 = arith.constant 0 : index
      %16 = vector.load %arg3[%c0_15, %c0_16] : memref<32x128xf32, #tpu.memory_space<vmem>>, vector<32x128xf32>
      %cst_17 = arith.constant 0.000000e+00 : f32
      %17 = vector.broadcast %cst_17 : f32 to vector<2x32xf32>
      %cst_18 = arith.constant 0.000000e+00 : f32
      %18 = vector.broadcast %cst_18 : f32 to vector<2x32xf32>
      %19 = vector.extract_strided_slice %15 {offsets = [0, 0], sizes = [2, 128], strides = [1, 1]} : vector<16x128xf32> to vector<2x128xf32>
      %cst_19 = arith.constant dense<0.000000e+00> : vector<2x128xf32>
      %20 = tpu.matmul %17, %16, %cst_19 {dimension_numbers = #tpu.dot_dimension_numbers<[1], [0], [0], [1], [0, 0, 1, 1], [], []>} : vector<2x32xf32>, vector<32x128xf32>, vector<2x128xf32> -> vector<2x128xf32>
      %21 = arith.addf %19, %20 : vector<2x128xf32>
      %22 = vector.extract_strided_slice %21 {offsets = [0, 0], sizes = [2, 32], strides = [1, 1]} : vector<2x128xf32> to vector<2x32xf32>
      %23 = arith.negf %22 : vector<2x32xf32>
      %24 = math.exp %23 : vector<2x32xf32>
      %cst_20 = arith.constant 1.000000e+00 : f32
      %25 = vector.broadcast %cst_20 : f32 to vector<2x32xf32>
      %26 = arith.addf %25, %24 : vector<2x32xf32>
      %27 = arith.divf %25, %26 : vector<2x32xf32>
      %28 = vector.extract_strided_slice %21 {offsets = [0, 32], sizes = [2, 32], strides = [1, 1]} : vector<2x128xf32> to vector<2x32xf32>
      %29 = arith.negf %28 : vector<2x32xf32>
      %30 = math.exp %29 : vector<2x32xf32>
      %cst_21 = arith.constant 1.000000e+00 : f32
      %31 = vector.broadcast %cst_21 : f32 to vector<2x32xf32>
      %32 = arith.addf %31, %30 : vector<2x32xf32>
      %33 = arith.divf %31, %32 : vector<2x32xf32>
      %34 = vector.extract_strided_slice %21 {offsets = [0, 64], sizes = [2, 32], strides = [1, 1]} : vector<2x128xf32> to vector<2x32xf32>
      %35 = math.tanh %34 : vector<2x32xf32>
      %36 = vector.extract_strided_slice %21 {offsets = [0, 96], sizes = [2, 32], strides = [1, 1]} : vector<2x128xf32> to vector<2x32xf32>
      %37 = arith.negf %36 : vector<2x32xf32>
      %38 = math.exp %37 : vector<2x32xf32>
      %cst_22 = arith.constant 1.000000e+00 : f32
      %39 = vector.broadcast %cst_22 : f32 to vector<2x32xf32>
      %40 = arith.addf %39, %38 : vector<2x32xf32>
      %41 = arith.divf %39, %40 : vector<2x32xf32>
      %42 = arith.mulf %33, %18 : vector<2x32xf32>
      %43 = arith.mulf %27, %35 : vector<2x32xf32>
      %44 = arith.addf %42, %43 : vector<2x32xf32>
      %45 = math.tanh %44 : vector<2x32xf32>
      %46 = arith.mulf %41, %45 : vector<2x32xf32>
      %47 = vector.extract_strided_slice %15 {offsets = [2, 0], sizes = [2, 128], strides = [1, 1]} : vector<16x128xf32> to vector<2x128xf32>
      %cst_23 = arith.constant dense<0.000000e+00> : vector<2x128xf32>
      %48 = tpu.matmul %46, %16, %cst_23 {dimension_numbers = #tpu.dot_dimension_numbers<[1], [0], [0], [1], [0, 0, 1, 1], [], []>} : vector<2x32xf32>, vector<32x128xf32>, vector<2x128xf32> -> vector<2x128xf32>
      %49 = arith.addf %47, %48 : vector<2x128xf32>
      %50 = vector.extract_strided_slice %49 {offsets = [0, 0], sizes = [2, 32], strides = [1, 1]} : vector<2x128xf32> to vector<2x32xf32>
      %51 = arith.negf %50 : vector<2x32xf32>
      %52 = math.exp %51 : vector<2x32xf32>
      %cst_24 = arith.constant 1.000000e+00 : f32
      %53 = vector.broadcast %cst_24 : f32 to vector<2x32xf32>
      %54 = arith.addf %53, %52 : vector<2x32xf32>
      %55 = arith.divf %53, %54 : vector<2x32xf32>
      %56 = vector.extract_strided_slice %49 {offsets = [0, 32], sizes = [2, 32], strides = [1, 1]} : vector<2x128xf32> to vector<2x32xf32>
      %57 = arith.negf %56 : vector<2x32xf32>
      %58 = math.exp %57 : vector<2x32xf32>
      %cst_25 = arith.constant 1.000000e+00 : f32
      %59 = vector.broadcast %cst_25 : f32 to vector<2x32xf32>
      %60 = arith.addf %59, %58 : vector<2x32xf32>
      %61 = arith.divf %59, %60 : vector<2x32xf32>
      %62 = vector.extract_strided_slice %49 {offsets = [0, 64], sizes = [2, 32], strides = [1, 1]} : vector<2x128xf32> to vector<2x32xf32>
      %63 = math.tanh %62 : vector<2x32xf32>
      %64 = vector.extract_strided_slice %49 {offsets = [0, 96], sizes = [2, 32], strides = [1, 1]} : vector<2x128xf32> to vector<2x32xf32>
      %65 = arith.negf %64 : vector<2x32xf32>
      %66 = math.exp %65 : vector<2x32xf32>
      %cst_26 = arith.constant 1.000000e+00 : f32
      %67 = vector.broadcast %cst_26 : f32 to vector<2x32xf32>
      %68 = arith.addf %67, %66 : vector<2x32xf32>
      %69 = arith.divf %67, %68 : vector<2x32xf32>
      %70 = arith.mulf %61, %44 : vector<2x32xf32>
      %71 = arith.mulf %55, %63 : vector<2x32xf32>
      %72 = arith.addf %70, %71 : vector<2x32xf32>
      %73 = math.tanh %72 : vector<2x32xf32>
      %74 = arith.mulf %69, %73 : vector<2x32xf32>
      %75 = vector.extract_strided_slice %15 {offsets = [4, 0], sizes = [2, 128], strides = [1, 1]} : vector<16x128xf32> to vector<2x128xf32>
      %cst_27 = arith.constant dense<0.000000e+00> : vector<2x128xf32>
      %76 = tpu.matmul %74, %16, %cst_27 {dimension_numbers = #tpu.dot_dimension_numbers<[1], [0], [0], [1], [0, 0, 1, 1], [], []>} : vector<2x32xf32>, vector<32x128xf32>, vector<2x128xf32> -> vector<2x128xf32>
      %77 = arith.addf %75, %76 : vector<2x128xf32>
      %78 = vector.extract_strided_slice %77 {offsets = [0, 0], sizes = [2, 32], strides = [1, 1]} : vector<2x128xf32> to vector<2x32xf32>
      %79 = arith.negf %78 : vector<2x32xf32>
      %80 = math.exp %79 : vector<2x32xf32>
      %cst_28 = arith.constant 1.000000e+00 : f32
      %81 = vector.broadcast %cst_28 : f32 to vector<2x32xf32>
      %82 = arith.addf %81, %80 : vector<2x32xf32>
      %83 = arith.divf %81, %82 : vector<2x32xf32>
      %84 = vector.extract_strided_slice %77 {offsets = [0, 32], sizes = [2, 32], strides = [1, 1]} : vector<2x128xf32> to vector<2x32xf32>
      %85 = arith.negf %84 : vector<2x32xf32>
      %86 = math.exp %85 : vector<2x32xf32>
      %cst_29 = arith.constant 1.000000e+00 : f32
      %87 = vector.broadcast %cst_29 : f32 to vector<2x32xf32>
      %88 = arith.addf %87, %86 : vector<2x32xf32>
      %89 = arith.divf %87, %88 : vector<2x32xf32>
      %90 = vector.extract_strided_slice %77 {offsets = [0, 64], sizes = [2, 32], strides = [1, 1]} : vector<2x128xf32> to vector<2x32xf32>
      %91 = math.tanh %90 : vector<2x32xf32>
      %92 = vector.extract_strided_slice %77 {offsets = [0, 96], sizes = [2, 32], strides = [1, 1]} : vector<2x128xf32> to vector<2x32xf32>
      %93 = arith.negf %92 : vector<2x32xf32>
      %94 = math.exp %93 : vector<2x32xf32>
      %cst_30 = arith.constant 1.000000e+00 : f32
      %95 = vector.broadcast %cst_30 : f32 to vector<2x32xf32>
      %96 = arith.addf %95, %94 : vector<2x32xf32>
      %97 = arith.divf %95, %96 : vector<2x32xf32>
      %98 = arith.mulf %89, %72 : vector<2x32xf32>
      %99 = arith.mulf %83, %91 : vector<2x32xf32>
      %100 = arith.addf %98, %99 : vector<2x32xf32>
      %101 = math.tanh %100 : vector<2x32xf32>
      %102 = arith.mulf %97, %101 : vector<2x32xf32>
      %103 = vector.extract_strided_slice %15 {offsets = [6, 0], sizes = [2, 128], strides = [1, 1]} : vector<16x128xf32> to vector<2x128xf32>
      %cst_31 = arith.constant dense<0.000000e+00> : vector<2x128xf32>
      %104 = tpu.matmul %102, %16, %cst_31 {dimension_numbers = #tpu.dot_dimension_numbers<[1], [0], [0], [1], [0, 0, 1, 1], [], []>} : vector<2x32xf32>, vector<32x128xf32>, vector<2x128xf32> -> vector<2x128xf32>
      %105 = arith.addf %103, %104 : vector<2x128xf32>
      %106 = vector.extract_strided_slice %105 {offsets = [0, 0], sizes = [2, 32], strides = [1, 1]} : vector<2x128xf32> to vector<2x32xf32>
      %107 = arith.negf %106 : vector<2x32xf32>
      %108 = math.exp %107 : vector<2x32xf32>
      %cst_32 = arith.constant 1.000000e+00 : f32
      %109 = vector.broadcast %cst_32 : f32 to vector<2x32xf32>
      %110 = arith.addf %109, %108 : vector<2x32xf32>
      %111 = arith.divf %109, %110 : vector<2x32xf32>
      %112 = vector.extract_strided_slice %105 {offsets = [0, 32], sizes = [2, 32], strides = [1, 1]} : vector<2x128xf32> to vector<2x32xf32>
      %113 = arith.negf %112 : vector<2x32xf32>
      %114 = math.exp %113 : vector<2x32xf32>
      %cst_33 = arith.constant 1.000000e+00 : f32
      %115 = vector.broadcast %cst_33 : f32 to vector<2x32xf32>
      %116 = arith.addf %115, %114 : vector<2x32xf32>
      %117 = arith.divf %115, %116 : vector<2x32xf32>
      %118 = vector.extract_strided_slice %105 {offsets = [0, 64], sizes = [2, 32], strides = [1, 1]} : vector<2x128xf32> to vector<2x32xf32>
      %119 = math.tanh %118 : vector<2x32xf32>
      %120 = vector.extract_strided_slice %105 {offsets = [0, 96], sizes = [2, 32], strides = [1, 1]} : vector<2x128xf32> to vector<2x32xf32>
      %121 = arith.negf %120 : vector<2x32xf32>
      %122 = math.exp %121 : vector<2x32xf32>
      %cst_34 = arith.constant 1.000000e+00 : f32
      %123 = vector.broadcast %cst_34 : f32 to vector<2x32xf32>
      %124 = arith.addf %123, %122 : vector<2x32xf32>
      %125 = arith.divf %123, %124 : vector<2x32xf32>
      %126 = arith.mulf %117, %100 : vector<2x32xf32>
      %127 = arith.mulf %111, %119 : vector<2x32xf32>
      %128 = arith.addf %126, %127 : vector<2x32xf32>
      %129 = math.tanh %128 : vector<2x32xf32>
      %130 = arith.mulf %125, %129 : vector<2x32xf32>
      %131 = vector.extract_strided_slice %15 {offsets = [8, 0], sizes = [2, 128], strides = [1, 1]} : vector<16x128xf32> to vector<2x128xf32>
      %cst_35 = arith.constant dense<0.000000e+00> : vector<2x128xf32>
      %132 = tpu.matmul %130, %16, %cst_35 {dimension_numbers = #tpu.dot_dimension_numbers<[1], [0], [0], [1], [0, 0, 1, 1], [], []>} : vector<2x32xf32>, vector<32x128xf32>, vector<2x128xf32> -> vector<2x128xf32>
      %133 = arith.addf %131, %132 : vector<2x128xf32>
      %134 = vector.extract_strided_slice %133 {offsets = [0, 0], sizes = [2, 32], strides = [1, 1]} : vector<2x128xf32> to vector<2x32xf32>
      %135 = arith.negf %134 : vector<2x32xf32>
      %136 = math.exp %135 : vector<2x32xf32>
      %cst_36 = arith.constant 1.000000e+00 : f32
      %137 = vector.broadcast %cst_36 : f32 to vector<2x32xf32>
      %138 = arith.addf %137, %136 : vector<2x32xf32>
      %139 = arith.divf %137, %138 : vector<2x32xf32>
      %140 = vector.extract_strided_slice %133 {offsets = [0, 32], sizes = [2, 32], strides = [1, 1]} : vector<2x128xf32> to vector<2x32xf32>
      %141 = arith.negf %140 : vector<2x32xf32>
      %142 = math.exp %141 : vector<2x32xf32>
      %cst_37 = arith.constant 1.000000e+00 : f32
      %143 = vector.broadcast %cst_37 : f32 to vector<2x32xf32>
      %144 = arith.addf %143, %142 : vector<2x32xf32>
      %145 = arith.divf %143, %144 : vector<2x32xf32>
      %146 = vector.extract_strided_slice %133 {offsets = [0, 64], sizes = [2, 32], strides = [1, 1]} : vector<2x128xf32> to vector<2x32xf32>
      %147 = math.tanh %146 : vector<2x32xf32>
      %148 = vector.extract_strided_slice %133 {offsets = [0, 96], sizes = [2, 32], strides = [1, 1]} : vector<2x128xf32> to vector<2x32xf32>
      %149 = arith.negf %148 : vector<2x32xf32>
      %150 = math.exp %149 : vector<2x32xf32>
      %cst_38 = arith.constant 1.000000e+00 : f32
      %151 = vector.broadcast %cst_38 : f32 to vector<2x32xf32>
      %152 = arith.addf %151, %150 : vector<2x32xf32>
      %153 = arith.divf %151, %152 : vector<2x32xf32>
      %154 = arith.mulf %145, %128 : vector<2x32xf32>
      %155 = arith.mulf %139, %147 : vector<2x32xf32>
      %156 = arith.addf %154, %155 : vector<2x32xf32>
      %157 = math.tanh %156 : vector<2x32xf32>
      %158 = arith.mulf %153, %157 : vector<2x32xf32>
      %159 = vector.extract_strided_slice %15 {offsets = [10, 0], sizes = [2, 128], strides = [1, 1]} : vector<16x128xf32> to vector<2x128xf32>
      %cst_39 = arith.constant dense<0.000000e+00> : vector<2x128xf32>
      %160 = tpu.matmul %158, %16, %cst_39 {dimension_numbers = #tpu.dot_dimension_numbers<[1], [0], [0], [1], [0, 0, 1, 1], [], []>} : vector<2x32xf32>, vector<32x128xf32>, vector<2x128xf32> -> vector<2x128xf32>
      %161 = arith.addf %159, %160 : vector<2x128xf32>
      %162 = vector.extract_strided_slice %161 {offsets = [0, 0], sizes = [2, 32], strides = [1, 1]} : vector<2x128xf32> to vector<2x32xf32>
      %163 = arith.negf %162 : vector<2x32xf32>
      %164 = math.exp %163 : vector<2x32xf32>
      %cst_40 = arith.constant 1.000000e+00 : f32
      %165 = vector.broadcast %cst_40 : f32 to vector<2x32xf32>
      %166 = arith.addf %165, %164 : vector<2x32xf32>
      %167 = arith.divf %165, %166 : vector<2x32xf32>
      %168 = vector.extract_strided_slice %161 {offsets = [0, 32], sizes = [2, 32], strides = [1, 1]} : vector<2x128xf32> to vector<2x32xf32>
      %169 = arith.negf %168 : vector<2x32xf32>
      %170 = math.exp %169 : vector<2x32xf32>
      %cst_41 = arith.constant 1.000000e+00 : f32
      %171 = vector.broadcast %cst_41 : f32 to vector<2x32xf32>
      %172 = arith.addf %171, %170 : vector<2x32xf32>
      %173 = arith.divf %171, %172 : vector<2x32xf32>
      %174 = vector.extract_strided_slice %161 {offsets = [0, 64], sizes = [2, 32], strides = [1, 1]} : vector<2x128xf32> to vector<2x32xf32>
      %175 = math.tanh %174 : vector<2x32xf32>
      %176 = vector.extract_strided_slice %161 {offsets = [0, 96], sizes = [2, 32], strides = [1, 1]} : vector<2x128xf32> to vector<2x32xf32>
      %177 = arith.negf %176 : vector<2x32xf32>
      %178 = math.exp %177 : vector<2x32xf32>
      %cst_42 = arith.constant 1.000000e+00 : f32
      %179 = vector.broadcast %cst_42 : f32 to vector<2x32xf32>
      %180 = arith.addf %179, %178 : vector<2x32xf32>
      %181 = arith.divf %179, %180 : vector<2x32xf32>
      %182 = arith.mulf %173, %156 : vector<2x32xf32>
      %183 = arith.mulf %167, %175 : vector<2x32xf32>
      %184 = arith.addf %182, %183 : vector<2x32xf32>
      %185 = math.tanh %184 : vector<2x32xf32>
      %186 = arith.mulf %181, %185 : vector<2x32xf32>
      %187 = vector.extract_strided_slice %15 {offsets = [12, 0], sizes = [2, 128], strides = [1, 1]} : vector<16x128xf32> to vector<2x128xf32>
      %cst_43 = arith.constant dense<0.000000e+00> : vector<2x128xf32>
      %188 = tpu.matmul %186, %16, %cst_43 {dimension_numbers = #tpu.dot_dimension_numbers<[1], [0], [0], [1], [0, 0, 1, 1], [], []>} : vector<2x32xf32>, vector<32x128xf32>, vector<2x128xf32> -> vector<2x128xf32>
      %189 = arith.addf %187, %188 : vector<2x128xf32>
      %190 = vector.extract_strided_slice %189 {offsets = [0, 0], sizes = [2, 32], strides = [1, 1]} : vector<2x128xf32> to vector<2x32xf32>
      %191 = arith.negf %190 : vector<2x32xf32>
      %192 = math.exp %191 : vector<2x32xf32>
      %cst_44 = arith.constant 1.000000e+00 : f32
      %193 = vector.broadcast %cst_44 : f32 to vector<2x32xf32>
      %194 = arith.addf %193, %192 : vector<2x32xf32>
      %195 = arith.divf %193, %194 : vector<2x32xf32>
      %196 = vector.extract_strided_slice %189 {offsets = [0, 32], sizes = [2, 32], strides = [1, 1]} : vector<2x128xf32> to vector<2x32xf32>
      %197 = arith.negf %196 : vector<2x32xf32>
      %198 = math.exp %197 : vector<2x32xf32>
      %cst_45 = arith.constant 1.000000e+00 : f32
      %199 = vector.broadcast %cst_45 : f32 to vector<2x32xf32>
      %200 = arith.addf %199, %198 : vector<2x32xf32>
      %201 = arith.divf %199, %200 : vector<2x32xf32>
      %202 = vector.extract_strided_slice %189 {offsets = [0, 64], sizes = [2, 32], strides = [1, 1]} : vector<2x128xf32> to vector<2x32xf32>
      %203 = math.tanh %202 : vector<2x32xf32>
      %204 = vector.extract_strided_slice %189 {offsets = [0, 96], sizes = [2, 32], strides = [1, 1]} : vector<2x128xf32> to vector<2x32xf32>
      %205 = arith.negf %204 : vector<2x32xf32>
      %206 = math.exp %205 : vector<2x32xf32>
      %cst_46 = arith.constant 1.000000e+00 : f32
      %207 = vector.broadcast %cst_46 : f32 to vector<2x32xf32>
      %208 = arith.addf %207, %206 : vector<2x32xf32>
      %209 = arith.divf %207, %208 : vector<2x32xf32>
      %210 = arith.mulf %201, %184 : vector<2x32xf32>
      %211 = arith.mulf %195, %203 : vector<2x32xf32>
      %212 = arith.addf %210, %211 : vector<2x32xf32>
      %213 = math.tanh %212 : vector<2x32xf32>
      %214 = arith.mulf %209, %213 : vector<2x32xf32>
      %215 = vector.extract_strided_slice %15 {offsets = [14, 0], sizes = [2, 128], strides = [1, 1]} : vector<16x128xf32> to vector<2x128xf32>
      %cst_47 = arith.constant dense<0.000000e+00> : vector<2x128xf32>
      %216 = tpu.matmul %214, %16, %cst_47 {dimension_numbers = #tpu.dot_dimension_numbers<[1], [0], [0], [1], [0, 0, 1, 1], [], []>} : vector<2x32xf32>, vector<32x128xf32>, vector<2x128xf32> -> vector<2x128xf32>
      %217 = arith.addf %215, %216 : vector<2x128xf32>
      %218 = vector.extract_strided_slice %217 {offsets = [0, 0], sizes = [2, 32], strides = [1, 1]} : vector<2x128xf32> to vector<2x32xf32>
      %219 = arith.negf %218 : vector<2x32xf32>
      %220 = math.exp %219 : vector<2x32xf32>
      %cst_48 = arith.constant 1.000000e+00 : f32
      %221 = vector.broadcast %cst_48 : f32 to vector<2x32xf32>
      %222 = arith.addf %221, %220 : vector<2x32xf32>
      %223 = arith.divf %221, %222 : vector<2x32xf32>
      %224 = vector.extract_strided_slice %217 {offsets = [0, 32], sizes = [2, 32], strides = [1, 1]} : vector<2x128xf32> to vector<2x32xf32>
      %225 = arith.negf %224 : vector<2x32xf32>
      %226 = math.exp %225 : vector<2x32xf32>
      %cst_49 = arith.constant 1.000000e+00 : f32
      %227 = vector.broadcast %cst_49 : f32 to vector<2x32xf32>
      %228 = arith.addf %227, %226 : vector<2x32xf32>
      %229 = arith.divf %227, %228 : vector<2x32xf32>
      %230 = vector.extract_strided_slice %217 {offsets = [0, 64], sizes = [2, 32], strides = [1, 1]} : vector<2x128xf32> to vector<2x32xf32>
      %231 = math.tanh %230 : vector<2x32xf32>
      %232 = vector.extract_strided_slice %217 {offsets = [0, 96], sizes = [2, 32], strides = [1, 1]} : vector<2x128xf32> to vector<2x32xf32>
      %233 = arith.negf %232 : vector<2x32xf32>
      %234 = math.exp %233 : vector<2x32xf32>
      %cst_50 = arith.constant 1.000000e+00 : f32
      %235 = vector.broadcast %cst_50 : f32 to vector<2x32xf32>
      %236 = arith.addf %235, %234 : vector<2x32xf32>
      %237 = arith.divf %235, %236 : vector<2x32xf32>
      %238 = arith.mulf %229, %212 : vector<2x32xf32>
      %239 = arith.mulf %223, %231 : vector<2x32xf32>
      %240 = arith.addf %238, %239 : vector<2x32xf32>
      %241 = math.tanh %240 : vector<2x32xf32>
      %242 = arith.mulf %237, %241 : vector<2x32xf32>
      %243 = tpu.concatenate %46, %74, %102, %130, %158, %186, %214, %242 in 0 : vector<2x32xf32>, vector<2x32xf32>, vector<2x32xf32>, vector<2x32xf32>, vector<2x32xf32>, vector<2x32xf32>, vector<2x32xf32>, vector<2x32xf32> -> vector<16x32xf32>
      %c0_51 = arith.constant 0 : index
      %c0_52 = arith.constant 0 : index
      %244 = vector.load %arg8[%c0_51, %c0_52] : memref<16x32xf32, #tpu.memory_space<vmem>>, vector<16x32xf32>
      tpu.vector_store %arg8[%c0_51, %c0_52], %243 {strides = array<i32>} : memref<16x32xf32, #tpu.memory_space<vmem>>, vector<16x32xf32>,
    } else {
    }
    %c0 = arith.constant 0 : index
    %c0_1 = arith.constant 0 : index
    %3 = vector.load %arg8[%c0, %c0_1] : memref<16x32xf32, #tpu.memory_space<vmem>>, vector<16x32xf32>
    %c0_2 = arith.constant 0 : index
    %c0_3 = arith.constant 0 : index
    %4 = vector.load %arg5[%c0_2, %c0_3] : memref<32x128xf32, #tpu.memory_space<vmem>>, vector<32x128xf32>
    %cst = arith.constant dense<0.000000e+00> : vector<16x128xf32>
    %5 = tpu.matmul %3, %4, %cst {dimension_numbers = #tpu.dot_dimension_numbers<[1], [0], [0], [1], [0, 0, 1, 1], [], []>} : vector<16x32xf32>, vector<32x128xf32>, vector<16x128xf32> -> vector<16x128xf32>
    %c0_4 = arith.constant 0 : index
    %c0_5 = arith.constant 0 : index
    %6 = vector.load %arg6[%c0_4, %c0_5] : memref<1x128xf32, #tpu.memory_space<vmem>>, vector<1x128xf32>
    %7 = vector.broadcast %6 : vector<1x128xf32> to vector<16x128xf32>
    %8 = arith.addf %5, %7 : vector<16x128xf32>
    %c0_6 = arith.constant 0 : index
    %c0_7 = arith.constant 0 : index
    %9 = vector.load %arg7[%c0_6, %c0_7] : memref<16x128xf32, #tpu.memory_space<vmem>>, vector<16x128xf32>
    tpu.vector_store %arg7[%c0_6, %c0_7], %8 {strides = array<i32>} : memref<16x128xf32, #tpu.memory_space<vmem>>, vector<16x128xf32>,
    return
  }
  func.func @transform_0(%arg0: i32) -> (i32, i32) {
    %c0_i32 = arith.constant 0 : i32
    %c0_i32_0 = arith.constant 0 : i32
    %c0_i32_1 = arith.constant 0 : i32
    return %c0_i32, %c0_i32_0 : i32, i32
  }
  func.func @transform_1(%arg0: i32) -> (i32, i32) {
    %c0_i32 = arith.constant 0 : i32
    %c0_i32_0 = arith.constant 0 : i32
    %c0_i32_1 = arith.constant 0 : i32
    return %c0_i32, %c0_i32_0 : i32, i32
  }
  func.func @transform_2(%arg0: i32) -> (i32, i32) {
    %c0_i32 = arith.constant 0 : i32
    %c0_i32_0 = arith.constant 0 : i32
    %c0_i32_1 = arith.constant 0 : i32
    return %c0_i32, %c0_i32_0 : i32, i32
  }
  func.func @transform_3(%arg0: i32) -> (i32, i32) {
    %c0_i32 = arith.constant 0 : i32
    %c0_i32_0 = arith.constant 0 : i32
    %c0_i32_1 = arith.constant 0 : i32
    return %c0_i32, %c0_i32_0 : i32, i32
  }
  func.func @transform_4(%arg0: i32) -> (i32, i32) {
    %c0_i32 = arith.constant 0 : i32
    %c0_i32_0 = arith.constant 0 : i32
    return %c0_i32, %arg0 : i32, i32
  }
  func.func @transform_5(%arg0: i32) -> (i32, i32) {
    %c0_i32 = arith.constant 0 : i32
    %c0_i32_0 = arith.constant 0 : i32
    return %c0_i32, %arg0 : i32, i32
  }
  func.func @transform_6(%arg0: i32) -> (i32, i32) {
    %c0_i32 = arith.constant 0 : i32
    %c0_i32_0 = arith.constant 0 : i32
    return %c0_i32, %arg0 : i32, i32
  }
}

</mosaic_0001>

<bundles_post_ra>
// kernel: decoder_rnn_forward.1
= control target key start
LH: loop header
LB: loop body
LE: loop exit
PB: predicated region body
PF: predicated region fallthrough
CT: control target
= control target key end

     0   :  { %11 = vsyncpa [#allocation4], 0  ;;  %s1963_s0 = inlined_call_operand.hbm [shape: f32[16,32], index: 0, kind: input, shape index: {}]   ;;  %s1964_s1 = inlined_call_operand.hbm [shape: f32[32,128], index: 1, kind: input, shape index: {}]   ;;  %s1965_s2 = inlined_call_operand.hbm [shape: f32[32,128], index: 2, kind: input, shape index: {}]   ;;  %s1966_s3 = inlined_call_operand.hbm [shape: f32[1,128], index: 3, kind: input, shape index: {}]   ;;  %s1967_s4 = inlined_call_operand.hbm [shape: f32[32,128], index: 4, kind: input, shape index: {}]   ;;  %s1968_s5 = inlined_call_operand.hbm [shape: f32[1,128], index: 5, kind: input, shape index: {}]   ;;  %s1969_s6 = inlined_call_operand.hbm [shape: f32[16,128], index: 6, kind: output, shape index: {}]  }
   0x1   :  { %12 = vsyncpa [#allocation7], 0 }
   0x2   :  { %13 = vsyncpa [#allocation10], 0 }
   0x3   :  { %14 = vsyncpa [#allocation13], 0 }
   0x4   :  { %15 = vsyncpa [#allocation5], 0  ;;  %s1672_s21 = smov [#allocation6]   ;;  %s1673_s23 = smov [#allocation9]  }
   0x5   :  { %s33_s22 = sshll.u32 %s1672_s21, 4  ;;  %s58_s24 = sshll.u32 %s1673_s23, 4  ;;  %s34_s22 = int_to_ptr.vmem [resolvable:$true] %s33_s22  ;;  %s1721_s24 = int_to_ptr.vmem [resolvable:$true] %s58_s24 }
   0x6   :  { %s1508_s27 = scalar_lea.hbm %s1964_s1, 512 }
   0x7   :  { %p1509_p0 = scmp.ne.s32.totalorder %s1964_s1, %s1508_s27  ;;  %p1512_p1 = scmp.lt.u32.totalorder %s1508_s27, %s1964_s1 }
   0x9   :  { %p1514_p2 = pnand %p1512_p1, %p1509_p0 }
   0xb   :  { %1517 = shalt.err (!%p1514_p2)
}
   0xc   :  { %s1518_s8 = scalar_lea.vmem %s34_s22, 512  ;;  %p1523_p4 = scmp.lt.s32.totalorder %s34_s22, %s34_s22 }
   0xd   :  { %p1519_p3 = scmp.ne.s32.totalorder %s34_s22, %s1518_s8  ;;  %p1524_p5 = scmp.lt.s32.totalorder %s1518_s8, %s1518_s8 }
   0xf   :  { %p1525_p6 = por %p1524_p5, %p1523_p4 }
  0x11   :  { %p1526_p7 = pnand %p1525_p6, %p1519_p3 }
  0x13   :  { %1529 = shalt.err (!%p1526_p7)
}
  0x14   :  { %s1674_s9 = smov 128   ;;  %s1675_s10 = smov 8  }
  0x15   :  { %39 = dma.hbm_to_vmem [thread:$0]  %s1964_s1, 512, %s34_s22, [#allocation7], %s1674_s9, %s1674_s9, %s1675_s10  }
  0x16   :  { %s1530_s15 = scalar_lea.hbm %s1966_s3, 16 }
  0x17   :  { %p1531_p8 = scmp.ne.s32.totalorder %s1966_s3, %s1530_s15  ;;  %p1534_p9 = scmp.lt.u32.totalorder %s1530_s15, %s1966_s3 }
  0x19   :  { %p1536_p10 = pnand %p1534_p9, %p1531_p8 }
  0x1b   :  { %1539 = shalt.err (!%p1536_p10)
}
  0x1c   :  { %s1540_s20 = scalar_lea.vmem %s1721_s24, 16  ;;  %s1544_s1 = scalar_lea.vmem %s1721_s24, 32 }
  0x1d   :  { %p1541_p11 = scmp.ne.s32.totalorder %s1721_s24, %s1540_s20  ;;  %p1545_p12 = scmp.lt.s32.totalorder %s1721_s24, %s1721_s24 }
  0x1e   :  { %p1546_p13 = scmp.lt.s32.totalorder %s1544_s1, %s1540_s20 }
  0x20   :  { %p1547_p0 = por %p1546_p13, %p1545_p12 }
  0x22   :  { %p1548_p1 = pnand %p1547_p0, %p1541_p11 }
  0x24   :  { %1551 = shalt.err (!%p1548_p1)
}
  0x25   :  { %61 = dma.hbm_to_vmem [thread:$0]  %s1966_s3, 16, %s1721_s24, [#allocation10]  }
  0x26   :  { %s1676_s23 = smov [#allocation3]   ;;  %s1677_s26 = smov [#allocation8]  }
  0x27   :  { %s21_s25 = sshll.u32 %s1676_s23, 4  ;;  %s45_s27 = sshll.u32 %s1677_s26, 4  ;;  %s22_s25 = int_to_ptr.vmem [resolvable:$true] %s21_s25  ;;  %s1756_s27 = int_to_ptr.vmem [resolvable:$true] %s45_s27 }
  0x28   :  { %s1552_s30 = scalar_lea.hbm %s1963_s0, 256 }
  0x29   :  { %p1553_p2 = scmp.ne.s32.totalorder %s1963_s0, %s1552_s30  ;;  %p1556_p3 = scmp.lt.u32.totalorder %s1552_s30, %s1963_s0 }
  0x2b   :  { %p1558_p4 = pnand %p1556_p3, %p1553_p2 }
  0x2d   :  { %1561 = shalt.err (!%p1558_p4)
}
  0x2e   :  { %s1562_s3 = scalar_lea.vmem %s22_s25, 256  ;;  %p1567_p6 = scmp.lt.s32.totalorder %s22_s25, %s22_s25 }
  0x2f   :  { %p1563_p5 = scmp.ne.s32.totalorder %s22_s25, %s1562_s3  ;;  %p1568_p7 = scmp.lt.s32.totalorder %s1562_s3, %s1562_s3 }
  0x31   :  { %p1569_p8 = por %p1568_p7, %p1567_p6 }
  0x33   :  { %p1570_p9 = pnand %p1569_p8, %p1563_p5 }
  0x35   :  { %1573 = shalt.err (!%p1570_p9)
}
  0x36   :  { %27 = dma.hbm_to_vmem [thread:$0]  %s1963_s0, 256, %s22_s25, [#allocation4], %s1674_s9, %s1674_s9, %s1675_s10  }
  0x37   :  { %s1574_s16 = scalar_lea.hbm %s1965_s2, 512 }
  0x38   :  { %p1575_p10 = scmp.ne.s32.totalorder %s1965_s2, %s1574_s16  ;;  %p1578_p11 = scmp.lt.u32.totalorder %s1574_s16, %s1965_s2 }
  0x3a   :  { %p1580_p12 = pnand %p1578_p11, %p1575_p10 }
  0x3c   :  { %1583 = shalt.err (!%p1580_p12)
}
  0x3d   :  { %s1584_s1 = scalar_lea.vmem %s1756_s27, 512  ;;  %p1589_p0 = scmp.lt.s32.totalorder %s1756_s27, %s1756_s27 }
  0x3e   :  { %p1585_p13 = scmp.ne.s32.totalorder %s1756_s27, %s1584_s1  ;;  %p1590_p1 = scmp.lt.s32.totalorder %s1584_s1, %s1584_s1 }
  0x40   :  { %p1591_p2 = por %p1590_p1, %p1589_p0 }
  0x42   :  { %p1592_p3 = pnand %p1591_p2, %p1585_p13 }
  0x44   :  { %1595 = shalt.err (!%p1592_p3)
}
  0x45   :  { %51 = dma.hbm_to_vmem [thread:$0]  %s1965_s2, 512, %s1756_s27, [#allocation7], %s1674_s9, %s1674_s9, %s1675_s10  }
  0x46   :  { %s1678_s22 = smov [#allocation11]   ;;  %s1679_s25 = smov [#allocation12]  }
  0x47   :  { %s67_s23 = sshll.u32 %s1678_s22, 4  ;;  %s80_s26 = sshll.u32 %s1679_s25, 4  ;;  %s68_s23 = int_to_ptr.vmem [resolvable:$true] %s67_s23  ;;  %s81_s26 = int_to_ptr.vmem [resolvable:$true] %s80_s26 }
  0x48   :  { %s1596_s30 = scalar_lea.hbm %s1967_s4, 512 }
  0x49   :  { %p1597_p4 = scmp.ne.s32.totalorder %s1967_s4, %s1596_s30  ;;  %p1600_p5 = scmp.lt.u32.totalorder %s1596_s30, %s1967_s4 }
  0x4b   :  { %p1602_p6 = pnand %p1600_p5, %p1597_p4 }
  0x4d   :  { %1605 = shalt.err (!%p1602_p6)
}
  0x4e   :  { %s1606_s2 = scalar_lea.vmem %s68_s23, 512  ;;  %p1611_p8 = scmp.lt.s32.totalorder %s68_s23, %s68_s23 }
  0x4f   :  { %p1607_p7 = scmp.ne.s32.totalorder %s68_s23, %s1606_s2  ;;  %p1612_p9 = scmp.lt.s32.totalorder %s1606_s2, %s1606_s2 }
  0x51   :  { %p1613_p10 = por %p1612_p9, %p1611_p8 }
  0x53   :  { %p1614_p11 = pnand %p1613_p10, %p1607_p7 }
  0x55   :  { %1617 = shalt.err (!%p1614_p11)
}
  0x56   :  { %73 = dma.hbm_to_vmem [thread:$0]  %s1967_s4, 512, %s68_s23, [#allocation10], %s1674_s9, %s1674_s9, %s1675_s10  }
  0x57   :  { %s1618_s14 = scalar_lea.hbm %s1968_s5, 16 }
  0x58   :  { %p1619_p12 = scmp.ne.s32.totalorder %s1968_s5, %s1618_s14  ;;  %p1622_p13 = scmp.lt.u32.totalorder %s1618_s14, %s1968_s5 }
  0x5a   :  { %p1624_p0 = pnand %p1622_p13, %p1619_p12 }
  0x5c   :  { %1627 = shalt.err (!%p1624_p0)
}
  0x5d   :  { %s1628_s19 = scalar_lea.vmem %s81_s26, 16  ;;  %s1632_s20 = scalar_lea.vmem %s81_s26, 32 }
  0x5e   :  { %p1629_p1 = scmp.ne.s32.totalorder %s81_s26, %s1628_s19  ;;  %p1633_p2 = scmp.lt.s32.totalorder %s81_s26, %s81_s26 }
  0x5f   :  { %p1634_p3 = scmp.lt.s32.totalorder %s1632_s20, %s1628_s19 }
  0x61   :  { %p1635_p4 = por %p1634_p3, %p1633_p2 }
  0x63   :  { %p1636_p5 = pnand %p1635_p4, %p1629_p1 }
  0x65   :  { %1639 = shalt.err (!%p1636_p5)
}
  0x66   :  { %83 = dma.hbm_to_vmem [thread:$0]  %s1968_s5, 16, %s81_s26, [#allocation13]  }
  0x67   :  { %1662 = dma.done.wait [#allocation4], 256  }
  0x68   :  { %1663 = vsyncadd [#allocation4], 4294967040 }
  0x69   :  { %1664 = dma.done.wait [#allocation7], 1024  }
  0x6a   :  { %1665 = vsyncadd [#allocation7], 4294966272 }
  0x6b   :  { %1666 = dma.done.wait [#allocation10], 528  }
  0x6c   :  { %1667 = vsyncadd [#allocation10], 4294966768 }
  0x6d   :  { %1668 = dma.done.wait [#allocation13], 16  }
  0x6e   :  { %1669 = vsyncadd [#allocation13], 4294967280  ;;  %v1680_v0 = vmov 0.0|0.0   ;;  %vm1681_vm0 = vmmov 0   ;;  %v1682_v1 = vmov 0.0   ;;  %v108_v2 = vld [vmem:[#allocation6] sm:$0xff] }
  0x6f   :  { %1374 = vmatprep.subr.bf16.mxu1 %v1680_v0  ;;  %1275 = vmatprep.mubr.msk.f32.mxu1 %vm1681_vm0, %v1682_v1  ;;  %v109_v3 = vld [vmem:[#allocation6 + $0x8] sm:$0xff]  ;;  %v201_v4 = vld [vmem:[#allocation8] sm:$0xff]  ;;  %vm119_vm1 = vcmask 261120   ;;  %v110_v7 = vld [vmem:[#allocation6 + $0x10] sm:$0xff]  ;;  %s1683_s5 = smov 64   ;;  %s1684_s0 = smov 32  }
  0x70   :  { %v1366_v5 = vpack.c.bf16 %v109_v3, %v108_v2  ;;  %v202_v6 = vld [vmem:[#allocation8 + $0x8] sm:$0xff]  ;;  %v111_v8 = vld [vmem:[#allocation6 + $0x18] sm:$0xff]  ;;  %v106_v11 = vld [vmem:[#allocation3] sm:$0xff]  ;;  %vm1047_vm2 = vcmask 1041408   ;;  %vm1049_vm3 = vcmask 1043456   ;;  %vm1051_vm4 = vcmask 1045504  }
  0x71   :  { %v1823_v9 = vpack.c.bf16 %v202_v6, %v201_v4  ;;  %v1370_v10 = vpack.c.bf16 %v111_v8, %v110_v7  ;;  %v203_v12 = vld [vmem:[#allocation8 + $0x10] sm:$0xff]  ;;  %v204_v13 = vld [vmem:[#allocation8 + $0x18] sm:$0xff]  ;;  %1264 = vmatprep.mubr.msk.f32.mxu0 %vm119_vm1, %v106_v11  ;;  %v1183_v16 = vld [vmem:[#allocation9] ss:$0 sm:$0xff]  ;;  %s1685_s21 = smov [#allocation14]  }
  0x72   :  { %1367 = vmatprep.subr.bf16.mxu0 %v1366_v5  ;;  %v1827_v14 = vpack.c.bf16 %v204_v13, %v203_v12  ;;  %v107_v15 = vld [vmem:[#allocation3 + $0x8] sm:$0xff]  ;;  %s1168_s22 = sshll.u32 %s1685_s21, 4  ;;  %s1169_s22 = int_to_ptr.vmem [resolvable:$true] %s1168_s22 }
  0x73   :  { %1369 = vmatpush3.bf16.msra.mxu0 %v1366_v5  ;;  %1376 = vmatpush3.bf16.msra.mxu1 %v1823_v9  ;;  %s1640_s23 = scalar_lea.vmem %s1169_s22, 256  ;;  %p1645_p7 = scmp.lt.s32.totalorder %s1169_s22, %s1169_s22 }
  0x74   :  { %1371 = vmatprep.subr.bf16.mxu0 %v1370_v10  ;;  %1377 = vmatprep.subr.bf16.mxu1 %v1680_v0  ;;  %p1641_p6 = scmp.ne.s32.totalorder %s1169_s22, %s1640_s23  ;;  %p1646_p8 = scmp.lt.s32.totalorder %s1640_s23, %s1640_s23 }
  0x76   :  { %p1647_p9 = por %p1646_p8, %p1645_p7 }
  0x77   :  { %1373 = vmatpush3.bf16.msra.mxu0 %v1370_v10  ;;  %1379 = vmatpush3.bf16.msra.mxu1 %v1827_v14 }
  0x78   :  { %1380 = vmatprep.subr.bf16.mxu0 %v1680_v0  ;;  %1386 = vmatprep.subr.bf16.mxu1 %v1680_v0  ;;  %p1648_p10 = pnand %p1647_p9, %p1641_p6 }
  0x7a   :  { %1265 = vmatmul.mubr.msk.f32.vlgmr.msra.gmra.mrb[0].mxu0 %vm119_vm1, %v107_v15  ;;  %1276 = vmatmul.mubr.f32.vlgmr.msra.gmra.mrb[0].mxu1 %v1682_v1 }
  0x7b   :  { %1382 = vmatpush3.bf16.msra.mxu0 %v1823_v9  ;;  %1286 = vmatprep.mubr.msk.f32.mxu0 %vm1681_vm0, %v1682_v1 }
  0x7c   :  { %1383 = vmatprep.subr.bf16.mxu0 %v1680_v0  ;;  %1388 = vmatpush3.bf16.msra.mxu1 %v1823_v9 }
  0x7d   :  { %1389 = vmatprep.subr.bf16.mxu1 %v1680_v0  ;;  %1297 = vmatprep.mubr.msk.f32.mxu1 %vm1681_vm0, %v1682_v1 }
  0x7f   :  { %1385 = vmatpush3.bf16.msra.mxu0 %v1827_v14 }
  0x80   :  { %1391 = vmatpush3.bf16.msra.mxu1 %v1827_v14  ;;  %1392 = vmatprep.subr.bf16.mxu0 %v1680_v0 }
  0x81   :  { %1398 = vmatprep.subr.bf16.mxu1 %v1680_v0 }
 0x14d   :  { %v1266_v17 = vpop.f32.mrb[0].mxu0  ;;  %v274_v18 = vpop.f32.mrb[0].mxu1 }
 0x14e   :  { %v1847_v19 = vadd.f32 %v1266_v17, %v1183_v16  ;;  %v192_v20 = vpop.f32.mrb[1].mxu0  ;;  %v1277_v21 = vpop.f32.mrb[1].mxu1 }
 0x14f   :  { %v1849_v22 = vadd.f32 %v1183_v16, %v192_v20 }
 0x151   :  { %v278_v23 = vadd.f32 %v274_v18, %v1849_v22 }
 0x153   :  { %1444 = vtanh.f32 %v278_v23  ;;  %v1186_v25 = vmul.f32 -1.442695, %v278_v23 }
 0x155   :  { %1446 = vpow2.f32 %v1186_v25 }
 0x15d   :  { %v1445_v24 = vpop.eup %1444 }
 0x15e   :  { %288 = vrot.lane.b32.xlu0 %v1445_v24, %s1683_s5 }
 0x15f   :  { %v1447_v26 = vpop.eup %1446 }
 0x160   :  { %v282_v27 = vadd.f32 1.0, %v1447_v26 }
 0x162   :  { %1448 = vrcp.f32 %v282_v27 }
 0x16c   :  { %v1449_v28 = vpop.eup %1448 }
 0x16d   :  { %v286_v31 = vmul.f32 0.0, %v1449_v28 }
 0x1d0   :  { %v289_v29 = vpop.permute.xlu0 %288 }
 0x1d1   :  { %v291_v30 = vmul.f32 %v1449_v28, %v289_v29 }
 0x1d3   :  { %293 = vrot.lane.b32.xlu0 %v291_v30, %s1684_s0 }
 0x245   :  { %v294_v32 = vpop.permute.xlu0 %293 }
 0x246   :  { %v296_v33 = vadd.f32 %v294_v32, %v286_v31 }
 0x248   :  { %1450 = vtanh.f32 %v296_v33  ;;  %v390_v49 = vrot.slane %v296_v33, 6 }
 0x252   :  { %v1451_v34 = vpop.eup %1450 }
 0x253   :  { %299 = vrot.lane.b32.xlu1 %v1451_v34, %s1683_s5 }
 0x2c5   :  { %v300_v35 = vpop.permute.xlu1 %299 }
 0x2c6   :  { %v1855_v36 = vmul.f32 %v1449_v28, %v300_v35 }
 0x2c8   :  { %304 = vrot.lane.b32.xlu1 %v1855_v36, %s1684_s0 }
 0x33a   :  { %v305_v37 = vpop.permute.xlu1 %304 }
 0x33b   :  { %1287 = vmatmul.mubr.msk.f32.vlgmr.msra.gmra.mrb[2].mxu0 %vm119_vm1, %v305_v37 }
 0x33c   :  { %1394 = vmatpush3.bf16.msra.mxu0 %v1823_v9  ;;  %1308 = vmatprep.mubr.msk.f32.mxu0 %vm1681_vm0, %v1682_v1 }
 0x33d   :  { %1395 = vmatprep.subr.bf16.mxu0 %v1680_v0 }
 0x340   :  { %1397 = vmatpush3.bf16.msra.mxu0 %v1827_v14 }
 0x341   :  { %1404 = vmatprep.subr.bf16.mxu0 %v1680_v0 }
 0x40e   :  { %v374_v38 = vpop.f32.mrb[2].mxu0 }
 0x40f   :  { %v379_v39 = vrot.slane %v374_v38, 6  ;;  %v1288_v40 = vpop.f32.mrb[3].mxu0 }
 0x411   :  { %v381_v41 = vadd.f32 %v379_v39, %v1849_v22 }
 0x413   :  { %1452 = vtanh.f32 %v381_v41  ;;  %v1188_v43 = vmul.f32 -1.442695, %v381_v41 }
 0x415   :  { %1454 = vpow2.f32 %v1188_v43 }
 0x41d   :  { %v1453_v42 = vpop.eup %1452 }
 0x41e   :  { %394 = vrot.lane.b32.xlu0 %v1453_v42, %s1683_s5 }
 0x41f   :  { %v1455_v44 = vpop.eup %1454 }
 0x420   :  { %v385_v45 = vadd.f32 1.0, %v1455_v44 }
 0x422   :  { %1456 = vrcp.f32 %v385_v45 }
 0x42c   :  { %v1457_v46 = vpop.eup %1456 }
 0x42d   :  { %v392_v50 = vmul.f32 %v1457_v46, %v390_v49 }
 0x490   :  { %v395_v47 = vpop.permute.xlu0 %394 }
 0x491   :  { %v397_v48 = vmul.f32 %v1457_v46, %v395_v47 }
 0x493   :  { %399 = vrot.lane.b32.xlu1 %v397_v48, %s1684_s0 }
 0x505   :  { %v400_v51 = vpop.permute.xlu1 %399 }
 0x506   :  { %v402_v52 = vadd.f32 %v400_v51, %v392_v50 }
 0x508   :  { %1458 = vtanh.f32 %v402_v52  ;;  %v497_v7 = vrot.slane %v402_v52, 6 }
 0x512   :  { %v1459_v53 = vpop.eup %1458 }
 0x513   :  { %405 = vrot.lane.b32.xlu0 %v1459_v53, %s1683_s5 }
 0x585   :  { %v406_v54 = vpop.permute.xlu0 %405 }
 0x586   :  { %v408_v55 = vmul.f32 %v1457_v46, %v406_v54 }
 0x588   :  { %v410_v56 = vrot.slane %v408_v55, 2  ;;  %v1048_v16 = vsel %vm1047_vm2, %v1855_v36, %v408_v55 }
 0x58a   :  { %411 = vrot.lane.b32.xlu1 %v410_v56, %s1684_s0 }
 0x5fc   :  { %v412_v57 = vpop.permute.xlu1 %411 }
 0x5fd   :  { %1298 = vmatmul.mubr.msk.f32.vlgmr.msra.gmra.mrb[2].mxu1 %vm119_vm1, %v412_v57 }
 0x5fe   :  { %1400 = vmatpush3.bf16.msra.mxu1 %v1823_v9  ;;  %1319 = vmatprep.mubr.msk.f32.mxu1 %vm1681_vm0, %v1682_v1 }
 0x5ff   :  { %1401 = vmatprep.subr.bf16.mxu1 %v1680_v0 }
 0x602   :  { %1403 = vmatpush3.bf16.msra.mxu1 %v1827_v14 }
 0x603   :  { %1410 = vmatprep.subr.bf16.mxu1 %v1680_v0 }
 0x6d0   :  { %v481_v58 = vpop.f32.mrb[2].mxu1 }
 0x6d1   :  { %v486_v59 = vrot.slane %v481_v58, 4  ;;  %v1299_v60 = vpop.f32.mrb[3].mxu1 }
 0x6d3   :  { %v488_v61 = vadd.f32 %v486_v59, %v1849_v22 }
 0x6d5   :  { %1460 = vtanh.f32 %v488_v61  ;;  %v1190_v63 = vmul.f32 -1.442695, %v488_v61 }
 0x6d7   :  { %1462 = vpow2.f32 %v1190_v63 }
 0x6df   :  { %v1461_v62 = vpop.eup %1460 }
 0x6e0   :  { %501 = vrot.lane.b32.xlu0 %v1461_v62, %s1683_s5 }
 0x6e1   :  { %v1463_v2 = vpop.eup %1462 }
 0x6e2   :  { %v492_v3 = vadd.f32 1.0, %v1463_v2 }
 0x6e4   :  { %1464 = vrcp.f32 %v492_v3 }
 0x6ee   :  { %v1465_v4 = vpop.eup %1464 }
 0x6ef   :  { %v499_v8 = vmul.f32 %v1465_v4, %v497_v7 }
 0x752   :  { %v502_v5 = vpop.permute.xlu0 %501 }
 0x753   :  { %v504_v6 = vmul.f32 %v1465_v4, %v502_v5 }
 0x755   :  { %506 = vrot.lane.b32.xlu1 %v504_v6, %s1684_s0 }
 0x7c7   :  { %v507_v10 = vpop.permute.xlu1 %506 }
 0x7c8   :  { %v509_v11 = vadd.f32 %v507_v10, %v499_v8 }
 0x7ca   :  { %1466 = vtanh.f32 %v509_v11  ;;  %v604_v33 = vrot.slane %v509_v11, 6 }
 0x7d4   :  { %v1467_v12 = vpop.eup %1466 }
 0x7d5   :  { %512 = vrot.lane.b32.xlu0 %v1467_v12, %s1683_s5 }
 0x847   :  { %v513_v13 = vpop.permute.xlu0 %512 }
 0x848   :  { %v515_v15 = vmul.f32 %v1465_v4, %v513_v13 }
 0x84a   :  { %v517_v17 = vrot.slane %v515_v15, 4  ;;  %v1050_v18 = vsel %vm1049_vm3, %v1048_v16, %v515_v15 }
 0x84c   :  { %518 = vrot.lane.b32.xlu1 %v517_v17, %s1684_s0 }
 0x8be   :  { %v519_v20 = vpop.permute.xlu1 %518 }
 0x8bf   :  { %1309 = vmatmul.mubr.msk.f32.vlgmr.msra.gmra.mrb[4].mxu0 %vm119_vm1, %v519_v20 }
 0x8c0   :  { %1406 = vmatpush3.bf16.msra.mxu0 %v1823_v9  ;;  %1330 = vmatprep.mubr.msk.f32.mxu0 %vm1681_vm0, %v1682_v1 }
 0x8c1   :  { %1407 = vmatprep.subr.bf16.mxu0 %v1680_v0 }
 0x8c4   :  { %1409 = vmatpush3.bf16.msra.mxu0 %v1827_v14 }
 0x8c5   :  { %1416 = vmatprep.subr.bf16.mxu0 %v1680_v0 }
 0x992   :  { %v588_v21 = vpop.f32.mrb[4].mxu0 }
 0x993   :  { %v593_v23 = vrot.slane %v588_v21, 2  ;;  %v1310_v24 = vpop.f32.mrb[5].mxu0 }
 0x995   :  { %v595_v25 = vadd.f32 %v593_v23, %v1849_v22 }
 0x997   :  { %1468 = vtanh.f32 %v595_v25  ;;  %v1192_v27 = vmul.f32 -1.442695, %v595_v25 }
 0x999   :  { %1470 = vpow2.f32 %v1192_v27 }
 0x9a1   :  { %v1469_v26 = vpop.eup %1468 }
 0x9a2   :  { %608 = vrot.lane.b32.xlu0 %v1469_v26, %s1683_s5 }
 0x9a3   :  { %v1471_v28 = vpop.eup %1470 }
 0x9a4   :  { %v599_v29 = vadd.f32 1.0, %v1471_v28 }
 0x9a6   :  { %1472 = vrcp.f32 %v599_v29 }
 0x9b0   :  { %v1473_v30 = vpop.eup %1472 }
 0x9b1   :  { %v606_v34 = vmul.f32 %v1473_v30, %v604_v33 }
 0xa14   :  { %v609_v31 = vpop.permute.xlu0 %608 }
 0xa15   :  { %v611_v32 = vmul.f32 %v1473_v30, %v609_v31 }
 0xa17   :  { %613 = vrot.lane.b32.xlu1 %v611_v32, %s1684_s0 }
 0xa89   :  { %v614_v35 = vpop.permute.xlu1 %613 }
 0xa8a   :  { %v616_v36 = vadd.f32 %v614_v35, %v606_v34 }
 0xa8c   :  { %1474 = vtanh.f32 %v616_v36  ;;  %v708_v52 = vrot.slane %v616_v36, 6 }
 0xa96   :  { %v1475_v22 = vpop.eup %1474 }
 0xa97   :  { %619 = vrot.lane.b32.xlu0 %v1475_v22, %s1683_s5 }
 0xb09   :  { %v620_v37 = vpop.permute.xlu0 %619 }
 0xb0a   :  { %v622_v38 = vmul.f32 %v1473_v30, %v620_v37 }
 0xb0c   :  { %v624_v39 = vrot.slane %v622_v38, 6  ;;  %v1898_v40 = vsel %vm1051_vm4, %v1050_v18, %v622_v38 }
 0xb0e   :  { %625 = vrot.lane.b32.xlu1 %v624_v39, %s1684_s0 }
 0xb80   :  { %v626_v41 = vpop.permute.xlu1 %625 }
 0xb81   :  { %1320 = vmatmul.mubr.msk.f32.vlgmr.msra.gmra.mrb[4].mxu1 %vm119_vm1, %v626_v41 }
 0xb82   :  { %1412 = vmatpush3.bf16.msra.mxu1 %v1823_v9  ;;  %1341 = vmatprep.mubr.msk.f32.mxu1 %vm1681_vm0, %v1682_v1 }
 0xb83   :  { %1413 = vmatprep.subr.bf16.mxu1 %v1680_v0 }
 0xb86   :  { %1415 = vmatpush3.bf16.msra.mxu1 %v1827_v14 }
 0xc54   :  { %v695_v42 = vpop.f32.mrb[4].mxu1 }
 0xc55   :  { %v699_v43 = vadd.f32 %v695_v42, %v1847_v19  ;;  %v1321_v44 = vpop.f32.mrb[5].mxu1 }
 0xc57   :  { %1476 = vtanh.f32 %v699_v43  ;;  %v1194_v46 = vmul.f32 -1.442695, %v699_v43 }
 0xc59   :  { %1478 = vpow2.f32 %v1194_v46 }
 0xc61   :  { %v1477_v45 = vpop.eup %1476 }
 0xc62   :  { %712 = vrot.lane.b32.xlu0 %v1477_v45, %s1683_s5 }
 0xc63   :  { %v1479_v47 = vpop.eup %1478 }
 0xc64   :  { %v703_v48 = vadd.f32 1.0, %v1479_v47 }
 0xc66   :  { %1480 = vrcp.f32 %v703_v48 }
 0xc70   :  { %v1481_v49 = vpop.eup %1480 }
 0xc71   :  { %v710_v53 = vmul.f32 %v1481_v49, %v708_v52 }
 0xcd4   :  { %v713_v50 = vpop.permute.xlu0 %712 }
 0xcd5   :  { %v715_v51 = vmul.f32 %v1481_v49, %v713_v50 }
 0xcd7   :  { %717 = vrot.lane.b32.xlu1 %v715_v51, %s1684_s0 }
 0xd49   :  { %v718_v54 = vpop.permute.xlu1 %717 }
 0xd4a   :  { %v720_v55 = vadd.f32 %v718_v54, %v710_v53 }
 0xd4c   :  { %1482 = vtanh.f32 %v720_v55 }
 0xd56   :  { %v1483_v56 = vpop.eup %1482 }
 0xd57   :  { %723 = vrot.lane.b32.xlu0 %v1483_v56, %s1683_s5 }
 0xdc9   :  { %v724_v57 = vpop.permute.xlu0 %723 }
 0xdca   :  { %v1911_v58 = vmul.f32 %v1481_v49, %v724_v57  ;;  %v1068_v57 = vld [vmem:[#allocation11] sm:$0xff] }
 0xdcc   :  { %728 = vrot.lane.b32.xlu1 %v1911_v58, %s1684_s0 }
 0xe3e   :  { %v729_v59 = vpop.permute.xlu1 %728 }
 0xe3f   :  { %1331 = vmatmul.mubr.msk.f32.vlgmr.msra.gmra.mrb[6].mxu0 %vm119_vm1, %v729_v59 }
 0xe40   :  { %1418 = vmatpush3.bf16.msra.mxu0 %v1823_v9  ;;  %1352 = vmatprep.mubr.msk.f32.mxu0 %vm1681_vm0, %v1682_v1 }
 0xe41   :  { %1419 = vmatprep.subr.bf16.mxu0 %v1680_v0  ;;  %v814_v0 = vrot.slane %v720_v55, 6 }
 0xe44   :  { %1421 = vmatpush3.bf16.msra.mxu0 %v1827_v14 }
 0xf12   :  { %v798_v60 = vpop.f32.mrb[6].mxu0 }
 0xf13   :  { %v803_v61 = vrot.slane %v798_v60, 6  ;;  %v1332_v62 = vpop.f32.mrb[7].mxu0  ;;  %v1070_v60 = vld [vmem:[#allocation11 + $0x10] sm:$0xff] }
 0xf15   :  { %v805_v63 = vadd.f32 %v803_v61, %v1847_v19 }
 0xf17   :  { %1484 = vtanh.f32 %v805_v63  ;;  %v1196_v3 = vmul.f32 -1.442695, %v805_v63 }
 0xf19   :  { %1486 = vpow2.f32 %v1196_v3 }
 0xf21   :  { %v1485_v2 = vpop.eup %1484 }
 0xf22   :  { %818 = vrot.lane.b32.xlu0 %v1485_v2, %s1683_s5 }
 0xf23   :  { %v1487_v4 = vpop.eup %1486 }
 0xf24   :  { %v809_v9 = vadd.f32 1.0, %v1487_v4 }
 0xf26   :  { %1488 = vrcp.f32 %v809_v9  ;;  %v1201_v9 = vld [vmem:[#allocation12] ss:$0 sm:$0xff] }
 0xf30   :  { %v1489_v5 = vpop.eup %1488 }
 0xf31   :  { %v816_v14 = vmul.f32 %v1489_v5, %v814_v0 }
 0xf94   :  { %v819_v1 = vpop.permute.xlu0 %818 }
 0xf95   :  { %v821_v6 = vmul.f32 %v1489_v5, %v819_v1 }
 0xf97   :  { %823 = vrot.lane.b32.xlu1 %v821_v6, %s1684_s0 }
0x1009   :  { %v824_v7 = vpop.permute.xlu1 %823 }
0x100a   :  { %v826_v8 = vadd.f32 %v824_v7, %v816_v14 }
0x100c   :  { %1490 = vtanh.f32 %v826_v8  ;;  %v921_v29 = vrot.slane %v826_v8, 6 }
0x1016   :  { %v1491_v10 = vpop.eup %1490 }
0x1017   :  { %829 = vrot.lane.b32.xlu0 %v1491_v10, %s1683_s5 }
0x1089   :  { %v830_v11 = vpop.permute.xlu0 %829 }
0x108a   :  { %v832_v12 = vmul.f32 %v1489_v5, %v830_v11 }
0x108c   :  { %v834_v13 = vrot.slane %v832_v12, 2  ;;  %v1053_v36 = vsel %vm1047_vm2, %v1911_v58, %v832_v12  ;;  %v1069_v58 = vld [vmem:[#allocation11 + $0x8] sm:$0xff] }
0x108d   :  { %v1422_v59 = vpack.c.bf16 %v1069_v58, %v1068_v57 }
0x108e   :  { %835 = vrot.lane.b32.xlu1 %v834_v13, %s1684_s0 }
0x108f   :  { %1423 = vmatprep.subr.bf16.mxu1 %v1422_v59 }
0x1100   :  { %v836_v15 = vpop.permute.xlu1 %835 }
0x1101   :  { %1342 = vmatmul.mubr.msk.f32.vlgmr.msra.gmra.mrb[6].mxu1 %vm119_vm1, %v836_v15 }
0x1102   :  { %1425 = vmatpush3.bf16.msra.mxu1 %v1422_v59 }
0x11d4   :  { %v905_v16 = vpop.f32.mrb[6].mxu1 }
0x11d5   :  { %v910_v17 = vrot.slane %v905_v16, 4  ;;  %v1343_v18 = vpop.f32.mrb[7].mxu1 }
0x11d7   :  { %v912_v20 = vadd.f32 %v910_v17, %v1847_v19 }
0x11d9   :  { %1492 = vtanh.f32 %v912_v20  ;;  %v1198_v23 = vmul.f32 -1.442695, %v912_v20 }
0x11db   :  { %1494 = vpow2.f32 %v1198_v23 }
0x11e3   :  { %v1493_v21 = vpop.eup %1492 }
0x11e4   :  { %925 = vrot.lane.b32.xlu0 %v1493_v21, %s1683_s5 }
0x11e5   :  { %v1495_v24 = vpop.eup %1494 }
0x11e6   :  { %v916_v25 = vadd.f32 1.0, %v1495_v24 }
0x11e8   :  { %1496 = vrcp.f32 %v916_v25 }
0x11f2   :  { %v1497_v26 = vpop.eup %1496 }
0x11f3   :  { %v923_v30 = vmul.f32 %v1497_v26, %v921_v29 }
0x1256   :  { %v926_v27 = vpop.permute.xlu0 %925 }
0x1257   :  { %v928_v28 = vmul.f32 %v1497_v26, %v926_v27 }
0x1259   :  { %930 = vrot.lane.b32.xlu1 %v928_v28, %s1684_s0 }
0x12cb   :  { %v931_v31 = vpop.permute.xlu1 %930 }
0x12cc   :  { %v933_v32 = vadd.f32 %v931_v31, %v923_v30 }
0x12ce   :  { %1498 = vtanh.f32 %v933_v32  ;;  %v1028_v51 = vrot.slane %v933_v32, 6 }
0x12d8   :  { %v1499_v33 = vpop.eup %1498 }
0x12d9   :  { %936 = vrot.lane.b32.xlu0 %v1499_v33, %s1683_s5 }
0x134b   :  { %v937_v34 = vpop.permute.xlu0 %936 }
0x134c   :  { %v939_v35 = vmul.f32 %v1497_v26, %v937_v34 }
0x134e   :  { %v941_v22 = vrot.slane %v939_v35, 4  ;;  %v1054_v37 = vsel %vm1049_vm3, %v1053_v36, %v939_v35 }
0x1350   :  { %942 = vrot.lane.b32.xlu1 %v941_v22, %s1684_s0 }
0x13c2   :  { %v943_v38 = vpop.permute.xlu1 %942 }
0x13c3   :  { %1353 = vmatmul.mubr.msk.f32.vlgmr.msra.gmra.mrb[8].mxu0 %vm119_vm1, %v943_v38 }
0x1496   :  { %v1012_v39 = vpop.f32.mrb[8].mxu0 }
0x1497   :  { %v1017_v41 = vrot.slane %v1012_v39, 2  ;;  %v1354_v42 = vpop.f32.mrb[9].mxu0 }
0x1499   :  { %v1019_v43 = vadd.f32 %v1017_v41, %v1847_v19 }
0x149b   :  { %1500 = vtanh.f32 %v1019_v43  ;;  %v1200_v45 = vmul.f32 -1.442695, %v1019_v43 }
0x149d   :  { %1502 = vpow2.f32 %v1200_v45 }
0x14a5   :  { %v1501_v44 = vpop.eup %1500 }
0x14a6   :  { %1032 = vrot.lane.b32.xlu0 %v1501_v44, %s1683_s5 }
0x14a7   :  { %v1503_v46 = vpop.eup %1502 }
0x14a8   :  { %v1023_v47 = vadd.f32 1.0, %v1503_v46 }
0x14aa   :  { %1504 = vrcp.f32 %v1023_v47 }
0x14b4   :  { %v1505_v48 = vpop.eup %1504 }
0x14b5   :  { %v1030_v52 = vmul.f32 %v1505_v48, %v1028_v51 }
0x1518   :  { %v1033_v49 = vpop.permute.xlu0 %1032 }
0x1519   :  { %v1035_v50 = vmul.f32 %v1505_v48, %v1033_v49 }
0x151b   :  { %1037 = vrot.lane.b32.xlu1 %v1035_v50, %s1684_s0 }
0x151f   :  { %1058 = vrot.lane.b32.xlu1 %v1898_v40, %s1684_s0  ;;  %v1071_v40 = vld [vmem:[#allocation11 + $0x18] sm:$0xff] }
0x1520   :  { %v1426_v61 = vpack.c.bf16 %v1071_v40, %v1070_v60 }
0x1522   :  { %1427 = vmatprep.subr.bf16.mxu1 %v1426_v61 }
0x1523   :  { %1429 = vmatpush3.bf16.msra.mxu1 %v1426_v61 }
0x158d   :  { %v1038_v19 = vpop.permute.xlu1 %1037 }
0x158e   :  { %v1040_v53 = vadd.f32 %v1038_v19, %v1030_v52 }
0x1590   :  { %1506 = vtanh.f32 %v1040_v53 }
0x1591   :  { %v1059_v54 = vpop.permute.xlu1 %1058 }
0x1592   :  { %1064 = vst.msk [vmem:[#allocation2] sm:$0xff] %vm119_vm1, %v1059_v54 }
0x1599   :  { %v1066_v55 = vld [vmem:[#allocation2] sm:$0xff] }
0x159a   :  { %v1507_v56 = vpop.eup %1506  ;;  %1363 = vmatprep.mubr.msk.f32.mxu1 %vm119_vm1, %v1066_v55 }
0x159b   :  { %1043 = vrot.lane.b32.xlu0 %v1507_v56, %s1683_s5 }
0x160d   :  { %v1044_v62 = vpop.permute.xlu0 %1043 }
0x160e   :  { %v1046_v63 = vmul.f32 %v1505_v48, %v1044_v62 }
0x1610   :  { %v1055_v2 = vsel %vm1051_vm4, %v1054_v37, %v1046_v63 }
0x1611   :  { %1060 = vrot.lane.b32.xlu0 %v1055_v2, %s1684_s0 }
0x1683   :  { %v1061_v3 = vpop.permute.xlu0 %1060 }
0x1684   :  { %1065 = vst.msk [vmem:[#allocation2 + $0x8] sm:$0xff] %vm119_vm1, %v1061_v3 }
0x168b   :  { %v1067_v4 = vld [vmem:[#allocation2 + $0x8] sm:$0xff] }
0x168c   :  { %1364 = vmatmul.mubr.msk.f32.vlgmr.msra.gmra.mrb[8].mxu1 %vm119_vm1, %v1067_v4 }
0x175f   :  { %v1365_v5 = vpop.f32.mrb[8].mxu1 }
0x1760   :  { %v1158_v1 = vadd.f32 %v1365_v5, %v1201_v9  ;;  %v1152_v6 = vpop.f32.mrb[9].mxu1 }
0x1761   :  { %v1153_v0 = vadd.f32 %v1201_v9, %v1152_v6 }
0x1762   :  { %1162 = vst [vmem:[#allocation14 + $0x8] sm:$0xff] %v1158_v1 }
0x1763   :  { %1161 = vst [vmem:[#allocation14] sm:$0xff] %v1153_v0 }
0x1764   :  { %1651 = shalt.err (!%p1648_p10)
}
0x1765   :  { %s1652_s28 = scalar_lea.hbm %s1969_s6, 256 }
0x1766   :  { %p1653_p11 = scmp.ne.s32.totalorder %s1969_s6, %s1652_s28  ;;  %p1656_p12 = scmp.lt.u32.totalorder %s1652_s28, %s1969_s6 }
0x1768   :  { %p1658_p13 = pnand %p1656_p12, %p1653_p11 }
0x176a   :  { %1661 = shalt.err (!%p1658_p13)
}
0x176b   :  { %1174 = dma.vmem_to_hbm [thread:$0]  %s1169_s22, 256, %s1969_s6, [#allocation5], %s1674_s9, %s1674_s9, %s1675_s10  }
0x176c   :  { %1670 = dma.done.wait [#allocation5], 256  }
0x176d   :  { %1671 = vsyncadd [#allocation5], 4294967040 }
0x176e   :  { %1178 = vsyncpa [#allocation4], 1 }
0x176f   :  { %1179 = vsyncpa [#allocation7], 1 }
0x1770   :  { %1180 = vsyncpa [#allocation10], 1 }
0x1771   :  { %1181 = vsyncpa [#allocation13], 1 }
0x1772   :  { %1182 = vsyncpa [#allocation5], 1 }

</bundles_post_ra>
